<compile_context>
chip_gen: v5e
topology: v5e:2x2
jax: 0.10.0
libtpu: 0.0.40
codegen_flags: <defaults>
</compile_context>

<pallas_src>
import functools

import jax
import jax.numpy as jnp
from jax.experimental import pallas as pl
from jax.experimental.pallas import tpu as pltpu


def _round_up(n, m):
    return ((n + m - 1) // m) * m


def _cdiv(a, b):
    return -(-a // b)


def actor_kernel(x_ref, w1_ref, b1_ref, w2_ref, b2_ref, w3_ref, b3_ref,
                 out_ref, *, max_action):
    """Feature-major fused actor. All refs are (features, batch_tile)."""
    # layer1 + ReLU: (256, S) @ (S, tb) -> (256, tb), f32 accumulation.
    h1 = jnp.dot(w1_ref[...], x_ref[...], preferred_element_type=jnp.float32)
    h1 = jnp.maximum(h1 + b1_ref[...], 0.0)                       # (256, tb) f32

    # layer2 + ReLU: (128, 256) @ (256, tb) -> (128, tb).
    h2 = jnp.dot(w2_ref[...], h1.astype(w2_ref.dtype),
                 preferred_element_type=jnp.float32)
    h2 = jnp.maximum(h2 + b2_ref[...], 0.0)                       # (128, tb) f32

    # layer3 + tanh (EUP) * max_action (VPU, static scalar): (A, 128)@(128, tb).
    h3 = jnp.dot(w3_ref[...], h2.astype(w3_ref.dtype),
                 preferred_element_type=jnp.float32)
    h3 = h3 + b3_ref[...]                                         # (A, tb)  f32
    out_ref[...] = (max_action * jnp.tanh(h3)).astype(out_ref.dtype)


def actor_forward(x, params, max_action, *, compute_dtype=jnp.bfloat16,
                  max_tile=4096, two_core_split_rows=4096):
    """Fused actor forward.

    x:                  (batch, state_dim) f32, PyTorch layout.
    params:             PyTorch-layout weights/biases (see init_params).
    compute_dtype:      matmul-operand dtype (default bf16). MXU accumulation
                        and all elementwise work stay f32. Pass None to keep
                        the input dtype (pure f32 path).
    max_tile:           max batch rows per grid step.
    two_core_split_rows: batches at/above this use >= 2 parallel grid steps
                        so v7x's two TensorCores are both fed.
    """
    w1, b1, w2, b2, w3, b3 = params
    batch, state_dim = x.shape
    action_dim = w3.shape[0]

    # Feature-major layout: batch on the lane axis -> lane-dense intermediates
    # and output stores. Cheap wrapper-side transpose (batch x state_dim).
    x_t = x.T
    if compute_dtype is not None and x_t.dtype != compute_dtype:
        x_t = x_t.astype(compute_dtype)
        w1, w2, w3 = (w.astype(compute_dtype) for w in (w1, w2, w3))

    # Tile the batch (lane) dim: pad to 128 lanes so tiles are unmasked, use
    # one grid step for typical batches, and an even count >= 2 of equal
    # "parallel" tiles for large batches (megacore sharding on v7x).
    padded0 = _round_up(batch, 128)
    n_tiles = max(_cdiv(padded0, max_tile),
                  2 if padded0 >= two_core_split_rows else 1)
    if n_tiles > 1 and n_tiles % 2:
        n_tiles += 1                      # keep TC load balanced on v7x
    tile_b = _round_up(_cdiv(padded0, n_tiles), 128)
    padded = tile_b * n_tiles
    if padded != batch:
        x_t = jnp.pad(x_t, ((0, 0), (0, padded - batch)))

    # Weights/biases: full-array blocks with constant index maps -> DMA'd once
    # and kept VMEM-resident across all grid steps.
    def full_spec(a):
        return pl.BlockSpec(a.shape, lambda i: (0, 0))

    kernel = functools.partial(actor_kernel, max_action=float(max_action))

    flops = 2 * padded * (state_dim * 256 + 256 * 128 + 128 * action_dim)
    bytes_accessed = (
        x_t.size * x_t.dtype.itemsize
        + sum(a.size * a.dtype.itemsize for a in (w1, b1, w2, b2, w3, b3))
        + padded * action_dim * 4)

    out_t = pl.pallas_call(
        kernel,
        out_shape=jax.ShapeDtypeStruct((action_dim, padded), jnp.float32),
        grid=(n_tiles,),
        in_specs=[
            pl.BlockSpec((state_dim, tile_b), lambda i: (0, i)),   # x, tiled
            full_spec(w1), full_spec(b1),
            full_spec(w2), full_spec(b2),
            full_spec(w3), full_spec(b3),
        ],
        out_specs=pl.BlockSpec((action_dim, tile_b), lambda i: (0, i)),
        compiler_params=pltpu.CompilerParams(
            dimension_semantics=("parallel",),
            vmem_limit_bytes=48 * 1024 * 1024),
        cost_estimate=pl.CostEstimate(
            flops=flops,
            transcendentals=padded * action_dim,
            bytes_accessed=bytes_accessed),
    )(x_t, w1, b1, w2, b2, w3, b3)

    return out_t[:, :batch].T


def init_params(key, state_dim, action_dim):
    """PyTorch-layout params, U[-1/sqrt(fan_in), +1/sqrt(fan_in)] init.

    Weights are (out_features, in_features); biases are (out_features, 1)
    columns (feature-major broadcasting inside the kernel).
    """
    ks = jax.random.split(key, 6)

    def linear(kw, kb, fan_in, fan_out):
        bound = 1.0 / jnp.sqrt(fan_in)
        w = jax.random.uniform(kw, (fan_out, fan_in), jnp.float32, -bound, bound)
        b = jax.random.uniform(kb, (fan_out, 1), jnp.float32, -bound, bound)
        return w, b

    w1, b1 = linear(ks[0], ks[1], state_dim, 256)
    w2, b2 = linear(ks[2], ks[3], 256, 128)
    w3, b3 = linear(ks[4], ks[5], 128, action_dim)
    return (w1, b1, w2, b2, w3, b3)


def actor_reference(x, params, max_action):
    w1, b1, w2, b2, w3, b3 = params
    h1 = jnp.maximum(x @ w1.T + b1.T, 0.0)
    h2 = jnp.maximum(h1 @ w2.T + b2.T, 0.0)
    return max_action * jnp.tanh(h2 @ w3.T + b3.T)


if __name__ == "__main__":
    key = jax.random.PRNGKey(0)
    k_params, k_x1, k_x2, k_x3 = jax.random.split(key, 4)

    # Env-plausible shapes: state_dim=8, action_dim=4.
    state_dim, action_dim = 8, 4
    max_action = 2.0
    params = init_params(k_params, state_dim, action_dim)

    # 1) Small inference-style batch, pure f32 path (tight tolerance).
    #    Single grid step, 2 -> 128-row lane pad sliced off afterwards.
    x_small = jax.random.normal(k_x1, (2, state_dim), dtype=jnp.float32)
    out_small = jax.block_until_ready(
        actor_forward(x_small, params, max_action, compute_dtype=None))
    ref_small = actor_reference(x_small, params, max_action)
    assert out_small.shape == (2, action_dim), out_small.shape
    assert jnp.allclose(out_small, ref_small, atol=1e-4, rtol=1e-4)

    # 2) Training-style batch, default bf16 matmul inputs (f32 accumulation).
    #    1000 rows -> padded 1024, single grid step, VMEM-resident weights.
    x_mid = jax.random.normal(k_x2, (1000, state_dim), dtype=jnp.float32)
    out_mid = jax.block_until_ready(actor_forward(x_mid, params, max_action))
    ref_mid = actor_reference(x_mid, params, max_action)
    assert out_mid.shape == (1000, action_dim), out_mid.shape
    assert jnp.allclose(out_mid, ref_mid, atol=5e-2, rtol=5e-2)

    # 3) Large batch: exercises the multi-step "parallel" grid (2 tiles of
    #    2304 rows) that feeds both TensorCores on v7x.
    x_big = jax.random.normal(k_x3, (4500, state_dim), dtype=jnp.float32)
    out_big = jax.block_until_ready(actor_forward(x_big, params, max_action))
    ref_big = actor_reference(x_big, params, max_action)
    assert out_big.shape == (4500, action_dim), out_big.shape
    assert jnp.allclose(out_big, ref_big, atol=5e-2, rtol=5e-2)

    print("KERNEL_OK")
</pallas_src>

<mosaic_0001>
module attributes {stable_mosaic.version = 11 : i64} {
  func.func @actor_kernel(%arg0: i32, %arg1: memref<8x128xf32, #tpu.memory_space<vmem>>, %arg2: memref<256x8xf32, #tpu.memory_space<vmem>>, %arg3: memref<256x1xf32, #tpu.memory_space<vmem>>, %arg4: memref<128x256xf32, #tpu.memory_space<vmem>>, %arg5: memref<128x1xf32, #tpu.memory_space<vmem>>, %arg6: memref<4x128xf32, #tpu.memory_space<vmem>>, %arg7: memref<4x1xf32, #tpu.memory_space<vmem>>, %arg8: memref<4x128xf32, #tpu.memory_space<vmem>>) attributes {dimension_semantics = [#tpu.dimension_semantics<parallel>], iteration_bounds = array<i64: 1>, scalar_prefetch = 0 : i64, scratch_operands = 0 : i64, tpu.core_type = #tpu.core_type<tc>, window_params = [{transform_indices = @transform_0, window_bounds = array<i64: 8, 128>}, {pipeline_mode = #tpu.pipeline_mode<synchronous>, transform_indices = @transform_1, window_bounds = array<i64: 256, 8>}, {pipeline_mode = #tpu.pipeline_mode<synchronous>, transform_indices = @transform_2, window_bounds = array<i64: 256, 1>}, {pipeline_mode = #tpu.pipeline_mode<synchronous>, transform_indices = @transform_3, window_bounds = array<i64: 128, 256>}, {pipeline_mode = #tpu.pipeline_mode<synchronous>, transform_indices = @transform_4, window_bounds = array<i64: 128, 1>}, {pipeline_mode = #tpu.pipeline_mode<synchronous>, transform_indices = @transform_5, window_bounds = array<i64: 4, 128>}, {pipeline_mode = #tpu.pipeline_mode<synchronous>, transform_indices = @transform_6, window_bounds = array<i64: 4, 1>}, {transform_indices = @transform_7, window_bounds = array<i64: 4, 128>}]} {
    %c0 = arith.constant 0 : index
    %c0_0 = arith.constant 0 : index
    %0 = vector.load %arg2[%c0, %c0_0] : memref<256x8xf32, #tpu.memory_space<vmem>>, vector<256x8xf32>
    %c0_1 = arith.constant 0 : index
    %c0_2 = arith.constant 0 : index
    %1 = vector.load %arg1[%c0_1, %c0_2] : memref<8x128xf32, #tpu.memory_space<vmem>>, vector<8x128xf32>
    %cst = arith.constant dense<0.000000e+00> : vector<256x128xf32>
    %2 = tpu.matmul %0, %1, %cst {dimension_numbers = #tpu.dot_dimension_numbers<[1], [0], [0], [1], [0, 0, 1, 1], [], []>} : vector<256x8xf32>, vector<8x128xf32>, vector<256x128xf32> -> vector<256x128xf32>
    %c0_3 = arith.constant 0 : index
    %c0_4 = arith.constant 0 : index
    %3 = vector.load %arg3[%c0_3, %c0_4] : memref<256x1xf32, #tpu.memory_space<vmem>>, vector<256x1xf32>
    %4 = vector.broadcast %3 : vector<256x1xf32> to vector<256x128xf32>
    %5 = arith.addf %2, %4 : vector<256x128xf32>
    %cst_5 = arith.constant 0.000000e+00 : f32
    %6 = vector.broadcast %cst_5 : f32 to vector<256x128xf32>
    %7 = arith.maximumf %5, %6 : vector<256x128xf32>
    %c0_6 = arith.constant 0 : index
    %c0_7 = arith.constant 0 : index
    %8 = vector.load %arg4[%c0_6, %c0_7] : memref<128x256xf32, #tpu.memory_space<vmem>>, vector<128x256xf32>
    %cst_8 = arith.constant dense<0.000000e+00> : vector<128x128xf32>
    %9 = tpu.matmul %8, %7, %cst_8 {dimension_numbers = #tpu.dot_dimension_numbers<[1], [0], [0], [1], [0, 0, 1, 1], [], []>} : vector<128x256xf32>, vector<256x128xf32>, vector<128x128xf32> -> vector<128x128xf32>
    %c0_9 = arith.constant 0 : index
    %c0_10 = arith.constant 0 : index
    %10 = vector.load %arg5[%c0_9, %c0_10] : memref<128x1xf32, #tpu.memory_space<vmem>>, vector<128x1xf32>
    %11 = vector.broadcast %10 : vector<128x1xf32> to vector<128x128xf32>
    %12 = arith.addf %9, %11 : vector<128x128xf32>
    %cst_11 = arith.constant 0.000000e+00 : f32
    %13 = vector.broadcast %cst_11 : f32 to vector<128x128xf32>
    %14 = arith.maximumf %12, %13 : vector<128x128xf32>
    %c0_12 = arith.constant 0 : index
    %c0_13 = arith.constant 0 : index
    %15 = vector.load %arg6[%c0_12, %c0_13] : memref<4x128xf32, #tpu.memory_space<vmem>>, vector<4x128xf32>
    %cst_14 = arith.constant dense<0.000000e+00> : vector<4x128xf32>
    %16 = tpu.matmul %15, %14, %cst_14 {dimension_numbers = #tpu.dot_dimension_numbers<[1], [0], [0], [1], [0, 0, 1, 1], [], []>} : vector<4x128xf32>, vector<128x128xf32>, vector<4x128xf32> -> vector<4x128xf32>
    %c0_15 = arith.constant 0 : index
    %c0_16 = arith.constant 0 : index
    %17 = vector.load %arg7[%c0_15, %c0_16] : memref<4x1xf32, #tpu.memory_space<vmem>>, vector<4x1xf32>
    %18 = vector.broadcast %17 : vector<4x1xf32> to vector<4x128xf32>
    %19 = arith.addf %16, %18 : vector<4x128xf32>
    %20 = math.tanh %19 : vector<4x128xf32>
    %cst_17 = arith.constant 2.000000e+00 : f32
    %21 = vector.broadcast %cst_17 : f32 to vector<4x128xf32>
    %22 = arith.mulf %21, %20 : vector<4x128xf32>
    %c0_18 = arith.constant 0 : index
    %c0_19 = arith.constant 0 : index
    %23 = vector.load %arg8[%c0_18, %c0_19] : memref<4x128xf32, #tpu.memory_space<vmem>>, vector<4x128xf32>
    tpu.vector_store %arg8[%c0_18, %c0_19], %22 {strides = array<i32>} : memref<4x128xf32, #tpu.memory_space<vmem>>, vector<4x128xf32>,
    return
  }
  func.func @transform_0(%arg0: i32) -> (i32, i32) {
    %c0_i32 = arith.constant 0 : i32
    %c0_i32_0 = arith.constant 0 : i32
    return %c0_i32, %arg0 : i32, i32
  }
  func.func @transform_1(%arg0: i32) -> (i32, i32) {
    %c0_i32 = arith.constant 0 : i32
    %c0_i32_0 = arith.constant 0 : i32
    %c0_i32_1 = arith.constant 0 : i32
    return %c0_i32, %c0_i32_0 : i32, i32
  }
  func.func @transform_2(%arg0: i32) -> (i32, i32) {
    %c0_i32 = arith.constant 0 : i32
    %c0_i32_0 = arith.constant 0 : i32
    %c0_i32_1 = arith.constant 0 : i32
    return %c0_i32, %c0_i32_0 : i32, i32
  }
  func.func @transform_3(%arg0: i32) -> (i32, i32) {
    %c0_i32 = arith.constant 0 : i32
    %c0_i32_0 = arith.constant 0 : i32
    %c0_i32_1 = arith.constant 0 : i32
    return %c0_i32, %c0_i32_0 : i32, i32
  }
  func.func @transform_4(%arg0: i32) -> (i32, i32) {
    %c0_i32 = arith.constant 0 : i32
    %c0_i32_0 = arith.constant 0 : i32
    %c0_i32_1 = arith.constant 0 : i32
    return %c0_i32, %c0_i32_0 : i32, i32
  }
  func.func @transform_5(%arg0: i32) -> (i32, i32) {
    %c0_i32 = arith.constant 0 : i32
    %c0_i32_0 = arith.constant 0 : i32
    %c0_i32_1 = arith.constant 0 : i32
    return %c0_i32, %c0_i32_0 : i32, i32
  }
  func.func @transform_6(%arg0: i32) -> (i32, i32) {
    %c0_i32 = arith.constant 0 : i32
    %c0_i32_0 = arith.constant 0 : i32
    %c0_i32_1 = arith.constant 0 : i32
    return %c0_i32, %c0_i32_0 : i32, i32
  }
  func.func @transform_7(%arg0: i32) -> (i32, i32) {
    %c0_i32 = arith.constant 0 : i32
    %c0_i32_0 = arith.constant 0 : i32
    return %c0_i32, %arg0 : i32, i32
  }
}

</mosaic_0001>

<bundles_post_ra>
// kernel: tpu_custom_call.1
= control target key start
LH: loop header
LB: loop body
LE: loop exit
PB: predicated region body
PF: predicated region fallthrough
CT: control target
= control target key end

     0   :  { %v880_v2 = vmov 0   ;;  %vm252_vm0 = vcmask 64512   ;;  %s1413_s0 = inlined_call_operand.vmem [shape: f32[8,128], index: 0, kind: input, shape index: {}]   ;;  %s1414_s1 = inlined_call_operand.vmem [shape: f32[256,8], index: 1, kind: input, shape index: {}]   ;;  %s1415_s2 = inlined_call_operand.vmem [shape: f32[256,1], index: 2, kind: input, shape index: {}]   ;;  %s1416_s3 = inlined_call_operand.vmem [shape: f32[128,256], index: 3, kind: input, shape index: {}]   ;;  %s1417_s4 = inlined_call_operand.vmem [shape: f32[128,1], index: 4, kind: input, shape index: {}]   ;;  %s1418_s5 = inlined_call_operand.vmem [shape: f32[4,128], index: 5, kind: input, shape index: {}]   ;;  %s1419_s6 = inlined_call_operand.vmem [shape: f32[4,1], index: 6, kind: input, shape index: {}]   ;;  %s1420_s7 = inlined_call_operand.hbm [shape: f32[4,128], index: 7, kind: output, shape index: {}]  }
   0x1   :  { %v59_v0 = vld [vmem:[%s1413_s0] sm:$0xff]  ;;  %v91_v1 = vld [vmem:[%s1415_s2 + $0xf8] sm:$0xff]  ;;  %851 = vset.pattern.permute.xlu2 %v880_v2  ;;  %850 = vset.pattern.permute.xlu1 %v880_v2  ;;  %v74_v4 = vld [vmem:[%s1415_s2 + $0x70] sm:$0xff] }
   0x2   :  { %v75_v3 = vld [vmem:[%s1415_s2 + $0x78] sm:$0xff]  ;;  %849 = vset.pattern.permute.xlu0 %v880_v2  ;;  %364 = vmatpush.msra.mxu0 %v59_v0  ;;  %v27_v5 = vld [vmem:[%s1414_s1] sm:$0xff]  ;;  %v90_v7 = vld [vmem:[%s1415_s2 + $0xf0] sm:$0xff] }
   0x3   :  { %v46_v6 = vld [vmem:[%s1414_s1 + $0x98] sm:$0xff]  ;;  %846 = vmatpush.msra.mxu3 %v59_v0  ;;  %249 = vperm.xlu0 %849, %v91_v1   ;;  %v89_v8 = vld [vmem:[%s1415_s2 + $0xe8] sm:$0xff]  ;;  %v88_v9 = vld [vmem:[%s1415_s2 + $0xe0] sm:$0xff] }
   0x4   :  { %169 = vperm.xlu1 %850, %v75_v3   ;;  %164 = vperm.xlu2 %851, %v74_v4  }
   0x5   :  { %814 = vmatmul.msk.f32.vlgmr.msra.gmra.mxu0 %vm252_vm0, %v27_v5  ;;  %833 = vmatmul.msk.f32.vlgmr.msra.gmra.mxu3 %vm252_vm0, %v46_v6 }
   0x6   :  { %12 = vsyncpa [#allocation3], 0  ;;  %v28_v10 = vld [vmem:[%s1414_s1 + $0x8] sm:$0xff]  ;;  %v47_v11 = vld [vmem:[%s1414_s1 + $0xa0] sm:$0xff]  ;;  %s881_s23 = smov [#allocation2]   ;;  %s805_s27 = sshll.u32 %s1420_s7, 4  ;;  %s806_s27 = int_to_ptr.hbm [resolvable:$true] %s805_s27 }
   0x7   :  { %v73_v12 = vld [vmem:[%s1415_s2 + $0x68] sm:$0xff]  ;;  %v87_v13 = vld [vmem:[%s1415_s2 + $0xd8] sm:$0xff]  ;;  %v72_v14 = vld [vmem:[%s1415_s2 + $0x60] sm:$0xff]  ;;  %s803_s24 = sshll.u32 %s881_s23, 4  ;;  %s804_s24 = int_to_ptr.vmem [resolvable:$true] %s803_s24 }
   0x8   :  { %v29_v15 = vld [vmem:[%s1414_s1 + $0x10] sm:$0xff]  ;;  %v48_v16 = vld [vmem:[%s1414_s1 + $0xa8] sm:$0xff]  ;;  %v71_v19 = vld [vmem:[%s1415_s2 + $0x58] sm:$0xff] }
   0x9   :  { %v86_v17 = vld [vmem:[%s1415_s2 + $0xd0] sm:$0xff]  ;;  %v85_v18 = vld [vmem:[%s1415_s2 + $0xc8] sm:$0xff]  ;;  %v30_v20 = vld [vmem:[%s1414_s1 + $0x18] sm:$0xff] }
   0xa   :  { %v49_v21 = vld [vmem:[%s1414_s1 + $0xb0] sm:$0xff]  ;;  %v84_v23 = vld [vmem:[%s1415_s2 + $0xc0] sm:$0xff]  ;;  %v69_v24 = vld [vmem:[%s1415_s2 + $0x48] sm:$0xff] }
   0xb   :  { %244 = vperm.xlu0 %849, %v90_v7   ;;  %v70_v22 = vld [vmem:[%s1415_s2 + $0x50] sm:$0xff]  ;;  %v31_v25 = vld [vmem:[%s1414_s1 + $0x20] sm:$0xff]  ;;  %v50_v26 = vld [vmem:[%s1414_s1 + $0xb8] sm:$0xff] }
   0xc   :  { %239 = vperm.xlu1 %850, %v89_v8   ;;  %234 = vperm.xlu2 %851, %v88_v9   ;;  %v83_v27 = vld [vmem:[%s1415_s2 + $0xb8] sm:$0xff]  ;;  %v82_v28 = vld [vmem:[%s1415_s2 + $0xb0] sm:$0xff]  ;;  %v68_v29 = vld [vmem:[%s1415_s2 + $0x40] sm:$0xff] }
   0xd   :  { %815 = vmatmul.msk.f32.gmra.mxu0 %vm252_vm0, %v28_v10  ;;  %834 = vmatmul.msk.f32.gmra.mxu3 %vm252_vm0, %v47_v11  ;;  %v32_v30 = vld [vmem:[%s1414_s1 + $0x28] sm:$0xff]  ;;  %v51_v31 = vld [vmem:[%s1414_s1 + $0xc0] sm:$0xff]  ;;  %v67_v32 = vld [vmem:[%s1415_s2 + $0x38] sm:$0xff] }
   0xe   :  { %v81_v33 = vld [vmem:[%s1415_s2 + $0xa8] sm:$0xff]  ;;  %v66_v34 = vld [vmem:[%s1415_s2 + $0x30] sm:$0xff]  ;;  %v80_v37 = vld [vmem:[%s1415_s2 + $0xa0] sm:$0xff] }
   0xf   :  { %v33_v35 = vld [vmem:[%s1414_s1 + $0x30] sm:$0xff]  ;;  %v52_v36 = vld [vmem:[%s1414_s1 + $0xc8] sm:$0xff]  ;;  %v79_v38 = vld [vmem:[%s1415_s2 + $0x98] sm:$0xff] }
  0x10   :  { %v65_v39 = vld [vmem:[%s1415_s2 + $0x28] sm:$0xff]  ;;  %v34_v40 = vld [vmem:[%s1414_s1 + $0x38] sm:$0xff]  ;;  %v53_v41 = vld [vmem:[%s1414_s1 + $0xd0] sm:$0xff] }
  0x11   :  { %v64_v42 = vld [vmem:[%s1415_s2 + $0x20] sm:$0xff]  ;;  %v78_v43 = vld [vmem:[%s1415_s2 + $0x90] sm:$0xff]  ;;  %v63_v44 = vld [vmem:[%s1415_s2 + $0x18] sm:$0xff] }
  0x12   :  { %v35_v45 = vld [vmem:[%s1414_s1 + $0x40] sm:$0xff]  ;;  %v54_v46 = vld [vmem:[%s1414_s1 + $0xd8] sm:$0xff]  ;;  %v77_v47 = vld [vmem:[%s1415_s2 + $0x88] sm:$0xff] }
  0x13   :  { %159 = vperm.xlu0 %849, %v73_v12   ;;  %v76_v48 = vld [vmem:[%s1415_s2 + $0x80] sm:$0xff]  ;;  %v62_v49 = vld [vmem:[%s1415_s2 + $0x10] sm:$0xff]  ;;  %v36_v50 = vld [vmem:[%s1414_s1 + $0x48] sm:$0xff] }
  0x14   :  { %229 = vperm.xlu1 %850, %v87_v13   ;;  %154 = vperm.xlu2 %851, %v72_v14   ;;  %v55_v51 = vld [vmem:[%s1414_s1 + $0xe0] sm:$0xff]  ;;  %v61_v52 = vld [vmem:[%s1415_s2 + $0x8] sm:$0xff]  ;;  %v541_v53 = vld [vmem:[%s1417_s4 + $0x78] sm:$0xff] }
  0x15   :  { %816 = vmatmul.msk.f32.gmra.mxu0 %vm252_vm0, %v29_v15  ;;  %835 = vmatmul.msk.f32.gmra.mxu3 %vm252_vm0, %v48_v16  ;;  %v60_v54 = vld [vmem:[%s1415_s2] sm:$0xff]  ;;  %v37_v55 = vld [vmem:[%s1414_s1 + $0x50] sm:$0xff]  ;;  %v56_v56 = vld [vmem:[%s1414_s1 + $0xe8] sm:$0xff] }
  0x16   :  { %v540_v57 = vld [vmem:[%s1417_s4 + $0x70] sm:$0xff]  ;;  %v538_v58 = vld [vmem:[%s1417_s4 + $0x60] sm:$0xff]  ;;  %v539_v59 = vld [vmem:[%s1417_s4 + $0x68] sm:$0xff] }
  0x17   :  { %v38_v60 = vld [vmem:[%s1414_s1 + $0x58] sm:$0xff]  ;;  %v57_v61 = vld [vmem:[%s1414_s1 + $0xf0] sm:$0xff]  ;;  %v535_v63 = vld [vmem:[%s1417_s4 + $0x48] sm:$0xff] }
  0x18   :  { %v537_v62 = vld [vmem:[%s1417_s4 + $0x58] sm:$0xff]  ;;  %v536_v0 = vld [vmem:[%s1417_s4 + $0x50] sm:$0xff]  ;;  %v39_v1 = vld [vmem:[%s1414_s1 + $0x60] sm:$0xff] }
  0x19   :  { %v58_v2 = vld [vmem:[%s1414_s1 + $0xf8] sm:$0xff]  ;;  %v534_v3 = vld [vmem:[%s1417_s4 + $0x40] sm:$0xff]  ;;  %v532_v4 = vld [vmem:[%s1417_s4 + $0x30] sm:$0xff] }
  0x1a   :  { %v533_v5 = vld [vmem:[%s1417_s4 + $0x38] sm:$0xff]  ;;  %v40_v6 = vld [vmem:[%s1414_s1 + $0x68] sm:$0xff]  ;;  %v530_v9 = vld [vmem:[%s1417_s4 + $0x20] sm:$0xff] }
  0x1b   :  { %224 = vperm.xlu0 %849, %v86_v17   ;;  %v531_v7 = vld [vmem:[%s1417_s4 + $0x28] sm:$0xff]  ;;  %v529_v8 = vld [vmem:[%s1417_s4 + $0x18] sm:$0xff]  ;;  %v41_v10 = vld [vmem:[%s1414_s1 + $0x70] sm:$0xff] }
  0x1c   :  { %219 = vperm.xlu2 %851, %v85_v18   ;;  %149 = vperm.xlu1 %850, %v71_v19   ;;  %v528_v11 = vld [vmem:[%s1417_s4 + $0x10] sm:$0xff]  ;;  %v526_v12 = vld [vmem:[%s1417_s4] sm:$0xff]  ;;  %v527_v13 = vld [vmem:[%s1417_s4 + $0x8] sm:$0xff] }
  0x1d   :  { %817 = vmatmul.msk.f32.gmra.mxu0 %vm252_vm0, %v30_v20  ;;  %836 = vmatmul.msk.f32.gmra.mxu3 %vm252_vm0, %v49_v21  ;;  %v42_v14 = vld [vmem:[%s1414_s1 + $0x78] sm:$0xff]  ;;  %v769_v15 = vld [vmem:[%s1419_s6] sm:$0xf]  ;;  %v44_v20 = vld [vmem:[%s1414_s1 + $0x88] sm:$0xff] }
  0x1e   :  { %v43_v17 = vld [vmem:[%s1414_s1 + $0x80] sm:$0xff] }
  0x23   :  { %144 = vperm.xlu0 %849, %v70_v22  }
  0x24   :  { %214 = vperm.xlu1 %850, %v84_v23   ;;  %139 = vperm.xlu2 %851, %v69_v24   ;;  %v45_v23 = vld [vmem:[%s1414_s1 + $0x90] sm:$0xff] }
  0x25   :  { %818 = vmatmul.msk.f32.gmra.mxu0 %vm252_vm0, %v31_v25  ;;  %837 = vmatmul.msk.f32.gmra.mxu3 %vm252_vm0, %v50_v26 }
  0x2b   :  { %209 = vperm.xlu0 %849, %v83_v27  }
  0x2c   :  { %204 = vperm.xlu2 %851, %v82_v28   ;;  %134 = vperm.xlu1 %850, %v68_v29  }
  0x2d   :  { %819 = vmatmul.msk.f32.gmra.mxu0 %vm252_vm0, %v32_v30  ;;  %838 = vmatmul.msk.f32.gmra.mxu3 %vm252_vm0, %v51_v31 }
  0x33   :  { %129 = vperm.xlu0 %849, %v67_v32  }
  0x34   :  { %199 = vperm.xlu1 %850, %v81_v33   ;;  %124 = vperm.xlu2 %851, %v66_v34  }
  0x35   :  { %820 = vmatmul.msk.f32.gmra.mxu0 %vm252_vm0, %v33_v35  ;;  %839 = vmatmul.msk.f32.gmra.mxu3 %vm252_vm0, %v52_v36 }
  0x3b   :  { %194 = vperm.xlu0 %849, %v80_v37  }
  0x3c   :  { %189 = vperm.xlu2 %851, %v79_v38   ;;  %119 = vperm.xlu1 %850, %v65_v39  }
  0x3d   :  { %821 = vmatmul.msk.f32.gmra.mxu0 %vm252_vm0, %v34_v40  ;;  %840 = vmatmul.msk.f32.gmra.mxu3 %vm252_vm0, %v53_v41 }
  0x43   :  { %114 = vperm.xlu0 %849, %v64_v42  }
  0x44   :  { %184 = vperm.xlu1 %850, %v78_v43   ;;  %109 = vperm.xlu2 %851, %v63_v44  }
  0x45   :  { %822 = vmatmul.msk.f32.gmra.mxu0 %vm252_vm0, %v35_v45  ;;  %841 = vmatmul.msk.f32.gmra.mxu3 %vm252_vm0, %v54_v46 }
  0x4b   :  { %179 = vperm.xlu0 %849, %v77_v47  }
  0x4c   :  { %174 = vperm.xlu2 %851, %v76_v48   ;;  %104 = vperm.xlu1 %850, %v62_v49  }
  0x4d   :  { %823 = vmatmul.msk.f32.gmra.mxu0 %vm252_vm0, %v36_v50  ;;  %842 = vmatmul.msk.f32.gmra.mxu3 %vm252_vm0, %v55_v51 }
  0x53   :  { %99 = vperm.xlu0 %849, %v61_v52  }
  0x54   :  { %619 = vperm.xlu2 %851, %v541_v53   ;;  %94 = vperm.xlu1 %850, %v60_v54  }
  0x55   :  { %824 = vmatmul.msk.f32.gmra.mxu0 %vm252_vm0, %v37_v55  ;;  %843 = vmatmul.msk.f32.gmra.mxu3 %vm252_vm0, %v56_v56 }
  0x5b   :  { %614 = vperm.xlu0 %849, %v540_v57  }
  0x5c   :  { %604 = vperm.xlu2 %851, %v538_v58   ;;  %609 = vperm.xlu1 %850, %v539_v59  }
  0x5d   :  { %825 = vmatmul.msk.f32.gmra.mxu0 %vm252_vm0, %v38_v60  ;;  %844 = vmatmul.msk.f32.gmra.mxu3 %vm252_vm0, %v57_v61 }
  0x5e   :  { %v1224_v34 = vpop.permute.xlu2 %164 }
  0x63   :  { %599 = vperm.xlu0 %849, %v537_v62  }
  0x64   :  { %589 = vperm.xlu2 %851, %v535_v63   ;;  %594 = vperm.xlu1 %850, %v536_v0  }
  0x65   :  { %826 = vmatmul.msk.f32.gmra.mxu0 %vm252_vm0, %v39_v1  ;;  %845 = vmatmul.msk.f32.gmra.mxu3 %vm252_vm0, %v58_v2 }
  0x66   :  { %v235_v39 = vpop.permute.xlu2 %234 }
  0x6b   :  { %584 = vperm.xlu0 %849, %v534_v3  }
  0x6c   :  { %574 = vperm.xlu2 %851, %v532_v4   ;;  %579 = vperm.xlu1 %850, %v533_v5  }
  0x6d   :  { %827 = vmatmul.msk.f32.gmra.mxu0 %vm252_vm0, %v40_v6 }
  0x6e   :  { %v1232_v45 = vpop.permute.xlu2 %154 }
  0x73   :  { %569 = vperm.xlu0 %849, %v531_v7  }
  0x74   :  { %559 = vperm.xlu2 %851, %v529_v8   ;;  %564 = vperm.xlu1 %850, %v530_v9  }
  0x75   :  { %828 = vmatmul.msk.f32.gmra.mxu0 %vm252_vm0, %v41_v10  ;;  %v250_v30 = vpop.permute.xlu0 %249 }
  0x76   :  { %v1220_v31 = vpop.permute.xlu1 %169  ;;  %v220_v51 = vpop.permute.xlu2 %219 }
  0x7b   :  { %554 = vperm.xlu0 %849, %v528_v11  }
  0x7c   :  { %544 = vperm.xlu2 %851, %v526_v12   ;;  %549 = vperm.xlu1 %850, %v527_v13  }
  0x7d   :  { %829 = vmatmul.msk.f32.gmra.mxu0 %vm252_vm0, %v42_v14  ;;  %v245_v35 = vpop.permute.xlu0 %244 }
  0x7e   :  { %v240_v37 = vpop.permute.xlu1 %239  ;;  %v1242_v56 = vpop.permute.xlu2 %139 }
  0x82   :  { %v1188_v16 = vpop.f32.mrf.mxu0 }
  0x83   :  { %772 = vperm.xlu0 %849, %v769_v15  }
  0x85   :  { %830 = vmatmul.msk.f32.gmra.mxu0 %vm252_vm0, %v43_v17  ;;  %v1228_v41 = vpop.permute.xlu0 %159 }
  0x86   :  { %v230_v43 = vpop.permute.xlu1 %229  ;;  %v205_v61 = vpop.permute.xlu2 %204 }
  0x88   :  { %v1194_v18 = vpop.f32.mrf.mxu3 }
  0x8a   :  { %v1196_v19 = vpop.f32.mrf.mxu0 }
  0x8d   :  { %831 = vmatmul.msk.f32.gmra.mxu0 %vm252_vm0, %v44_v20  ;;  %v225_v47 = vpop.permute.xlu0 %224 }
  0x8e   :  { %v1236_v48 = vpop.permute.xlu1 %149  ;;  %v125_v12 = vpop.permute.xlu2 %124 }
  0x90   :  { %v1202_v21 = vpop.f32.mrf.mxu3 }
  0x92   :  { %v1204_v22 = vpop.f32.mrf.mxu0 }
  0x95   :  { %832 = vmatmul.msk.f32.gmra.mxu0 %vm252_vm0, %v45_v23  ;;  %v1240_v52 = vpop.permute.xlu0 %144 }
  0x96   :  { %v215_v53 = vpop.permute.xlu1 %214 }
  0x98   :  { %v1210_v24 = vpop.f32.mrf.mxu3 }
  0x9a   :  { %v1212_v25 = vpop.f32.mrf.mxu0 }
  0x9d   :  { %v210_v57 = vpop.permute.xlu0 %209 }
  0x9e   :  { %v1244_v59 = vpop.permute.xlu1 %134 }
  0xa0   :  { %v1214_v26 = vpop.f32.mrf.mxu3 }
  0xa2   :  { %v1216_v27 = vpop.f32.mrf.mxu0 }
  0xa5   :  { %v1246_v1 = vpop.permute.xlu0 %129 }
  0xa6   :  { %v200_v5 = vpop.permute.xlu1 %199 }
  0xa8   :  { %v435_v28 = vpop.f32.mrf.mxu3 }
  0xaa   :  { %v1218_v29 = vpop.f32.mrf.mxu0 }
  0xad   :  { %v195_v17 = vpop.permute.xlu0 %194 }
  0xb0   :  { %v438_v32 = vpop.f32.mrf.mxu3 }
  0xb1   :  { %v439_v20 = vadd.f32 %v438_v32, %v215_v53  ;;  %v190_v32 = vpop.permute.xlu2 %189  ;;  %v427_v53 = vadd.f32 %v1202_v21, %v195_v17 }
  0xb2   :  { %v1222_v33 = vpop.f32.mrf.mxu0 }
  0xb8   :  { %v441_v36 = vpop.f32.mrf.mxu3 }
  0xb9   :  { %v442_v14 = vadd.f32 %v441_v36, %v220_v51 }
  0xba   :  { %v1226_v38 = vpop.f32.mrf.mxu0 }
  0xc0   :  { %v444_v40 = vpop.f32.mrf.mxu3 }
  0xc1   :  { %v445_v10 = vadd.f32 %v444_v40, %v225_v47 }
  0xc2   :  { %v1230_v42 = vpop.f32.mrf.mxu0 }
  0xc3   :  { %v488_v23 = vmax.f32 %v445_v10, 0.0 }
  0xc8   :  { %v447_v44 = vpop.f32.mrf.mxu3 }
  0xc9   :  { %v448_v8 = vadd.f32 %v447_v44, %v230_v43  ;;  %v486_v43 = vmax.f32 %v439_v20, 0.0  ;;  %v430_v44 = vadd.f32 %v1210_v24, %v200_v5 }
  0xca   :  { %v1234_v46 = vpop.f32.mrf.mxu0 }
  0xcb   :  { %v489_v15 = vmax.f32 %v448_v8, 0.0 }
  0xd0   :  { %v450_v49 = vpop.f32.mrf.mxu3 }
  0xd1   :  { %v451_v6 = vadd.f32 %v450_v49, %v235_v39  ;;  %v433_v39 = vadd.f32 %v1214_v26, %v205_v61  ;;  %v115_v26 = vpop.permute.xlu0 %114 }
  0xd2   :  { %v1238_v50 = vpop.f32.mrf.mxu0 }
  0xd3   :  { %v490_v11 = vmax.f32 %v451_v6, 0.0  ;;  %v484_v51 = vmax.f32 %v433_v39, 0.0  ;;  %v385_v6 = vadd.f32 %v1222_v33, %v125_v12  ;;  %v496_v39 = vld [vmem:[%s1416_s3 + $0x10] sm:$0xff] }
  0xd8   :  { %v453_v54 = vpop.f32.mrf.mxu3 }
  0xd9   :  { %v454_v3 = vadd.f32 %v453_v54, %v240_v37  ;;  %v487_v37 = vmax.f32 %v442_v14, 0.0 }
  0xda   :  { %v399_v55 = vpop.f32.mrf.mxu0 }
  0xdb   :  { %v491_v9 = vmax.f32 %v454_v3, 0.0  ;;  %v110_v3 = vpop.permute.xlu2 %109 }
  0xdc   :  { %v376_v8 = vadd.f32 %v1212_v25, %v110_v3 }
  0xde   :  { %v465_v14 = vmax.f32 %v376_v8, 0.0 }
  0xe0   :  { %v456_v58 = vpop.f32.mrf.mxu3 }
  0xe1   :  { %v457_v63 = vadd.f32 %v456_v58, %v245_v35  ;;  %v436_v35 = vadd.f32 %v435_v28, %v210_v57  ;;  %v424_v57 = vadd.f32 %v1194_v18, %v190_v32  ;;  %v483_v58 = vmax.f32 %v430_v44, 0.0  ;;  %v501_v44 = vld [vmem:[%s1416_s3 + $0x38] sm:$0xff] }
  0xe2   :  { %v402_v60 = vpop.f32.mrf.mxu0  ;;  %v394_v18 = vadd.f32 %v1234_v46, %v1242_v56  ;;  %v505_v32 = vld [vmem:[%s1416_s3 + $0x58] sm:$0xff] }
  0xe3   :  { %v492_v7 = vmax.f32 %v457_v63, 0.0  ;;  %v485_v47 = vmax.f32 %v436_v35, 0.0  ;;  %v403_v24 = vadd.f32 %v402_v60, %v1232_v45  ;;  %v180_v60 = vpop.permute.xlu0 %179 }
  0xe8   :  { %v459_v62 = vpop.f32.mrf.mxu3 }
  0xe9   :  { %v460_v0 = vadd.f32 %v459_v62, %v250_v30  ;;  %v120_v30 = vpop.permute.xlu1 %119  ;;  %v482_v62 = vmax.f32 %v427_v53, 0.0  ;;  %v507_v53 = vld [vmem:[%s1416_s3 + $0x68] sm:$0xff] }
  0xea   :  { %v405_v2 = vpop.f32.mrf.mxu0  ;;  %v382_v56 = vadd.f32 %v1218_v29, %v120_v30 }
  0xeb   :  { %v493_v4 = vmax.f32 %v460_v0, 0.0  ;;  %v406_v28 = vadd.f32 %v405_v2, %v1228_v41  ;;  %v481_v41 = vmax.f32 %v424_v57, 0.0  ;;  %v397_v0 = vadd.f32 %v1238_v50, %v1240_v52  ;;  %v511_v57 = vld [vmem:[%s1416_s3 + $0x88] sm:$0xff] }
  0xec   :  { %v474_v2 = vmax.f32 %v403_v24, 0.0  ;;  %v471_v50 = vmax.f32 %v394_v18, 0.0  ;;  %v513_v24 = vld [vmem:[%s1416_s3 + $0x98] sm:$0xff] }
  0xed   :  { %687 = vmatpush.msra.mxu2 %v493_v4  ;;  %v475_v63 = vmax.f32 %v406_v28, 0.0  ;;  %v388_v4 = vadd.f32 %v1226_v38, %v1246_v1  ;;  %v100_v38 = vpop.permute.xlu0 %99  ;;  %v506_v28 = vld [vmem:[%s1416_s3 + $0x60] sm:$0xff] }
  0xef   :  { %688 = vmatpush.msra.mxu2 %v492_v7  ;;  %v469_v7 = vmax.f32 %v388_v4, 0.0 }
  0xf1   :  { %689 = vmatpush.msra.mxu2 %v491_v9  ;;  %v467_v9 = vmax.f32 %v382_v56, 0.0 }
  0xf2   :  { %v408_v13 = vpop.f32.mrf.mxu0 }
  0xf3   :  { %690 = vmatpush.msra.mxu2 %v490_v11  ;;  %v409_v36 = vadd.f32 %v408_v13, %v1224_v34  ;;  %v185_v34 = vpop.permute.xlu1 %184  ;;  %v175_v13 = vpop.permute.xlu2 %174 }
  0xf5   :  { %691 = vmatpush.msra.mxu2 %v489_v15  ;;  %v476_v61 = vmax.f32 %v409_v36, 0.0  ;;  %v370_v15 = vadd.f32 %v1196_v19, %v100_v38  ;;  %v494_v19 = vld [vmem:[%s1416_s3] sm:$0xff]  ;;  %v503_v36 = vld [vmem:[%s1416_s3 + $0x48] sm:$0xff] }
  0xf7   :  { %692 = vmatpush.msra.mxu2 %v488_v23  ;;  %v463_v30 = vmax.f32 %v370_v15, 0.0 }
  0xf9   :  { %693 = vmatpush.msra.mxu2 %v487_v37 }
  0xfa   :  { %v411_v40 = vpop.f32.mrf.mxu0 }
  0xfb   :  { %694 = vmatpush.msra.mxu2 %v486_v43  ;;  %v412_v49 = vadd.f32 %v411_v40, %v1220_v31  ;;  %v400_v31 = vadd.f32 %v399_v55, %v1236_v48  ;;  %v391_v48 = vadd.f32 %v1230_v42, %v1244_v59  ;;  %v472_v55 = vmax.f32 %v397_v0, 0.0  ;;  %v105_v52 = vpop.permute.xlu1 %104  ;;  %v499_v43 = vld [vmem:[%s1416_s3 + $0x28] sm:$0xff]  ;;  %v498_v40 = vld [vmem:[%s1416_s3 + $0x20] sm:$0xff] }
  0xfc   :  { %v468_v42 = vmax.f32 %v385_v6, 0.0  ;;  %v379_v59 = vadd.f32 %v1216_v27, %v115_v26  ;;  %v373_v11 = vadd.f32 %v1204_v22, %v105_v52  ;;  %v495_v22 = vld [vmem:[%s1416_s3 + $0x8] sm:$0xff]  ;;  %v508_v26 = vld [vmem:[%s1416_s3 + $0x70] sm:$0xff]  ;;  %v522_v52 = vld [vmem:[%s1416_s3 + $0xe0] sm:$0xff] }
  0xfd   :  { %695 = vmatpush.msra.mxu2 %v485_v47  ;;  %v477_v54 = vmax.f32 %v412_v49, 0.0  ;;  %v473_v45 = vmax.f32 %v400_v31, 0.0  ;;  %v470_v46 = vmax.f32 %v391_v48, 0.0  ;;  %v500_v47 = vld [vmem:[%s1416_s3 + $0x30] sm:$0xff]  ;;  %v502_v49 = vld [vmem:[%s1416_s3 + $0x40] sm:$0xff]  ;;  %v519_v0 = vld [vmem:[%s1416_s3 + $0xc8] sm:$0xff] }
  0xfe   :  { %v466_v10 = vmax.f32 %v379_v59, 0.0  ;;  %v464_v20 = vmax.f32 %v373_v11, 0.0  ;;  %v514_v31 = vld [vmem:[%s1416_s3 + $0xa0] sm:$0xff]  ;;  %v521_v48 = vld [vmem:[%s1416_s3 + $0xd8] sm:$0xff] }
  0xff   :  { %622 = vmatpush.msra.mxu1 %v477_v54  ;;  %696 = vmatpush.msra.mxu2 %v484_v51  ;;  %v504_v51 = vld [vmem:[%s1416_s3 + $0x50] sm:$0xff]  ;;  %v509_v54 = vld [vmem:[%s1416_s3 + $0x78] sm:$0xff] }
 0x101   :  { %623 = vmatpush.msra.mxu1 %v476_v61  ;;  %697 = vmatpush.msra.mxu2 %v483_v58  ;;  %v510_v58 = vld [vmem:[%s1416_s3 + $0x80] sm:$0xff]  ;;  %v512_v61 = vld [vmem:[%s1416_s3 + $0x90] sm:$0xff] }
 0x102   :  { %v414_v21 = vpop.f32.mrf.mxu0 }
 0x103   :  { %624 = vmatpush.msra.mxu1 %v475_v63  ;;  %698 = vmatpush.msra.mxu2 %v482_v62  ;;  %v95_v29 = vpop.permute.xlu1 %94  ;;  %v415_v17 = vadd.f32 %v414_v21, %v175_v13  ;;  %v1335_v62 = vpop.permute.xlu2 %619  ;;  %v517_v63 = vld [vmem:[%s1416_s3 + $0xb8] sm:$0xff]  ;;  %v516_v21 = vld [vmem:[%s1416_s3 + $0xb0] sm:$0xff] }
 0x104   :  { %v367_v25 = vadd.f32 %v1188_v16, %v95_v29  ;;  %v497_v16 = vld [vmem:[%s1416_s3 + $0x18] sm:$0xff] }
 0x105   :  { %625 = vmatpush.msra.mxu1 %v474_v2  ;;  %699 = vmatpush.msra.mxu2 %v481_v41  ;;  %v478_v35 = vmax.f32 %v415_v17, 0.0  ;;  %v518_v2 = vld [vmem:[%s1416_s3 + $0xc0] sm:$0xff] }
 0x106   :  { %v462_v37 = vmax.f32 %v367_v25, 0.0 }
 0x107   :  { %626 = vmatpush.msra.mxu1 %v473_v45 }
 0x109   :  { %627 = vmatpush.msra.mxu1 %v472_v55  ;;  %v520_v55 = vld [vmem:[%s1416_s3 + $0xd0] sm:$0xff] }
 0x10a   :  { %v417_v5 = vpop.f32.mrf.mxu0 }
 0x10b   :  { %628 = vmatpush.msra.mxu1 %v471_v50  ;;  %v418_v33 = vadd.f32 %v417_v5, %v180_v60  ;;  %v1346_v41 = vpop.permute.xlu2 %604  ;;  %v1354_v18 = vpop.permute.xlu1 %609  ;;  %v523_v50 = vld [vmem:[%s1416_s3 + $0xe8] sm:$0xff] }
 0x10c   :  { %v1364_v60 = vpop.permute.xlu0 %614 }
 0x10d   :  { %629 = vmatpush.msra.mxu1 %v470_v46  ;;  %v479_v23 = vmax.f32 %v418_v33, 0.0  ;;  %v525_v46 = vld [vmem:[%s1416_s3 + $0xf8] sm:$0xff] }
 0x10f   :  { %630 = vmatpush.msra.mxu1 %v469_v7  ;;  %v524_v7 = vld [vmem:[%s1416_s3 + $0xf0] sm:$0xff] }
 0x111   :  { %631 = vmatpush.msra.mxu1 %v468_v42 }
 0x112   :  { %v420_v1 = vpop.f32.mrf.mxu0 }
 0x113   :  { %v421_v12 = vadd.f32 %v420_v1, %v185_v34  ;;  %632 = vmatpush.msra.mxu1 %v467_v9  ;;  %v515_v34 = vld [vmem:[%s1416_s3 + $0xa8] sm:$0xff]  ;;  %v1356_v45 = vpop.permute.xlu2 %589  ;;  %v1366_v3 = vpop.permute.xlu1 %594 }
 0x114   :  { %v1374_v5 = vpop.permute.xlu0 %599 }
 0x115   :  { %v480_v27 = vmax.f32 %v421_v12, 0.0  ;;  %633 = vmatpush.msra.mxu1 %v466_v10 }
 0x117   :  { %634 = vmatpush.msra.mxu1 %v465_v14  ;;  %700 = vmatpush.msra.mxu2 %v480_v27 }
 0x119   :  { %635 = vmatpush.msra.mxu1 %v464_v20  ;;  %701 = vmatpush.msra.mxu2 %v479_v23 }
 0x11b   :  { %636 = vmatpush.msra.mxu1 %v463_v30  ;;  %702 = vmatpush.msra.mxu2 %v478_v35  ;;  %v575_v4 = vpop.permute.xlu2 %574  ;;  %v580_v6 = vpop.permute.xlu1 %579 }
 0x11c   :  { %703 = vmatmul.f32.vlgmr.msra.gmra.mxu2 %v495_v22  ;;  %v585_v42 = vpop.permute.xlu0 %584 }
 0x11d   :  { %637 = vmatpush.msra.mxu1 %v462_v37 }
 0x11e   :  { %638 = vmatmul.f32.vlgmr.msra.gmra.mxu1 %v494_v19 }
 0x123   :  { %v560_v56 = vpop.permute.xlu2 %559  ;;  %v565_v59 = vpop.permute.xlu1 %564 }
 0x124   :  { %706 = vmatmul.f32.gmra.mxu2 %v497_v16  ;;  %v570_v11 = vpop.permute.xlu0 %569 }
 0x126   :  { %641 = vmatmul.f32.gmra.mxu1 %v496_v39 }
 0x12b   :  { %v545_v9 = vpop.permute.xlu2 %544  ;;  %v550_v12 = vpop.permute.xlu1 %549 }
 0x12c   :  { %709 = vmatmul.f32.gmra.mxu2 %v499_v43  ;;  %v555_v17 = vpop.permute.xlu0 %554 }
 0x12e   :  { %644 = vmatmul.f32.gmra.mxu1 %v498_v40 }
 0x134   :  { %712 = vmatmul.f32.gmra.mxu2 %v501_v44 }
 0x136   :  { %647 = vmatmul.f32.gmra.mxu1 %v500_v47 }
 0x13c   :  { %715 = vmatmul.f32.gmra.mxu2 %v503_v36 }
 0x13e   :  { %650 = vmatmul.f32.gmra.mxu1 %v502_v49 }
 0x144   :  { %718 = vmatmul.f32.gmra.mxu2 %v505_v32 }
 0x146   :  { %653 = vmatmul.f32.gmra.mxu1 %v504_v51 }
 0x14c   :  { %721 = vmatmul.f32.gmra.mxu2 %v507_v53 }
 0x14e   :  { %656 = vmatmul.f32.gmra.mxu1 %v506_v28 }
 0x154   :  { %724 = vmatmul.f32.gmra.mxu2 %v509_v54 }
 0x156   :  { %659 = vmatmul.f32.gmra.mxu1 %v508_v26 }
 0x15c   :  { %727 = vmatmul.f32.gmra.mxu2 %v511_v57 }
 0x15e   :  { %662 = vmatmul.f32.gmra.mxu1 %v510_v58 }
 0x164   :  { %730 = vmatmul.f32.gmra.mxu2 %v513_v24 }
 0x166   :  { %665 = vmatmul.f32.gmra.mxu1 %v512_v61 }
 0x16c   :  { %733 = vmatmul.f32.gmra.mxu2 %v515_v34 }
 0x16e   :  { %668 = vmatmul.f32.gmra.mxu1 %v514_v31 }
 0x174   :  { %736 = vmatmul.f32.gmra.mxu2 %v517_v63 }
 0x176   :  { %671 = vmatmul.f32.gmra.mxu1 %v516_v21 }
 0x17c   :  { %739 = vmatmul.f32.gmra.mxu2 %v519_v0 }
 0x17e   :  { %674 = vmatmul.f32.gmra.mxu1 %v518_v2 }
 0x184   :  { %742 = vmatmul.f32.gmra.mxu2 %v521_v48 }
 0x186   :  { %677 = vmatmul.f32.gmra.mxu1 %v520_v55 }
 0x18c   :  { %745 = vmatmul.f32.gmra.mxu2 %v523_v50 }
 0x18e   :  { %680 = vmatmul.f32.gmra.mxu1 %v522_v52 }
 0x194   :  { %748 = vmatmul.f32.gmra.mxu2 %v525_v46 }
 0x196   :  { %683 = vmatmul.f32.gmra.mxu1 %v524_v7 }
 0x19b   :  { %v639_v8 = vpop.f32.mrf.mxu1 }
 0x19c   :  { %v640_v38 = vadd.f32 %v639_v8, %v545_v9 }
 0x19f   :  { %v704_v1 = vpop.f32.mrf.mxu2 }
 0x1a0   :  { %v1382_v10 = vadd.f32 %v704_v1, %v640_v38 }
 0x1a3   :  { %v642_v33 = vpop.f32.mrf.mxu1 }
 0x1a4   :  { %v643_v13 = vadd.f32 %v642_v33, %v550_v12 }
 0x1a7   :  { %v707_v29 = vpop.f32.mrf.mxu2 }
 0x1a8   :  { %v1384_v14 = vadd.f32 %v707_v29, %v643_v13 }
 0x1ab   :  { %v645_v15 = vpop.f32.mrf.mxu1 }
 0x1ac   :  { %v646_v27 = vadd.f32 %v645_v15, %v555_v17 }
 0x1af   :  { %v710_v20 = vpop.f32.mrf.mxu2 }
 0x1b0   :  { %v1386_v25 = vadd.f32 %v710_v20, %v646_v27 }
 0x1b3   :  { %v648_v23 = vpop.f32.mrf.mxu1 }
 0x1b4   :  { %v649_v30 = vadd.f32 %v648_v23, %v560_v56 }
 0x1b7   :  { %v713_v35 = vpop.f32.mrf.mxu2 }
 0x1b8   :  { %v1388_v22 = vadd.f32 %v713_v35, %v649_v30 }
 0x1bb   :  { %v651_v37 = vpop.f32.mrf.mxu1 }
 0x1bc   :  { %v652_v19 = vadd.f32 %v651_v37, %v565_v59  ;;  %v755_v37 = vmax.f32 %v1388_v22, 0.0 }
 0x1bf   :  { %v716_v16 = vpop.f32.mrf.mxu2 }
 0x1c0   :  { %v1390_v39 = vadd.f32 %v716_v16, %v652_v19  ;;  %v754_v19 = vmax.f32 %v1386_v25, 0.0  ;;  %v753_v16 = vmax.f32 %v1384_v14, 0.0 }
 0x1c3   :  { %v654_v43 = vpop.f32.mrf.mxu1 }
 0x1c4   :  { %v655_v40 = vadd.f32 %v654_v43, %v570_v11  ;;  %v752_v43 = vmax.f32 %v1382_v10, 0.0 }
 0x1c7   :  { %v719_v44 = vpop.f32.mrf.mxu2 }
 0x1c8   :  { %v1392_v47 = vadd.f32 %v719_v44, %v655_v40  ;;  %v768_v40 = vld [vmem:[%s1418_s5] sm:$0xf] }
 0x1ca   :  { %v757_v35 = vmax.f32 %v1392_v47, 0.0 }
 0x1cb   :  { %v657_v36 = vpop.f32.mrf.mxu1 }
 0x1cc   :  { %v658_v49 = vadd.f32 %v657_v36, %v575_v4 }
 0x1cf   :  { %v722_v32 = vpop.f32.mrf.mxu2 }
 0x1d0   :  { %v723_v51 = vadd.f32 %v722_v32, %v658_v49 }
 0x1d3   :  { %v660_v53 = vpop.f32.mrf.mxu1 }
 0x1d4   :  { %v661_v28 = vadd.f32 %v660_v53, %v580_v6 }
 0x1d7   :  { %v725_v54 = vpop.f32.mrf.mxu2 }
 0x1d8   :  { %v726_v26 = vadd.f32 %v725_v54, %v661_v28 }
 0x1da   :  { %v759_v30 = vmax.f32 %v726_v26, 0.0 }
 0x1db   :  { %v663_v57 = vpop.f32.mrf.mxu1 }
 0x1dc   :  { %v664_v58 = vadd.f32 %v663_v57, %v585_v42 }
 0x1df   :  { %v728_v24 = vpop.f32.mrf.mxu2 }
 0x1e0   :  { %v729_v61 = vadd.f32 %v728_v24, %v664_v58 }
 0x1e3   :  { %v666_v34 = vpop.f32.mrf.mxu1 }
 0x1e7   :  { %v731_v31 = vpop.f32.mrf.mxu2 }
 0x1eb   :  { %v669_v63 = vpop.f32.mrf.mxu1 }
 0x1ec   :  { %v670_v29 = vadd.f32 %v669_v63, %v1366_v3  ;;  %v758_v3 = vmax.f32 %v723_v51, 0.0 }
 0x1ef   :  { %v734_v21 = vpop.f32.mrf.mxu2 }
 0x1f0   :  { %v735_v17 = vadd.f32 %v734_v21, %v670_v29 }
 0x1f3   :  { %v672_v0 = vpop.f32.mrf.mxu1 }
 0x1f4   :  { %v673_v33 = vadd.f32 %v672_v0, %v1374_v5  ;;  %v760_v5 = vmax.f32 %v729_v61, 0.0 }
 0x1f7   :  { %v737_v2 = vpop.f32.mrf.mxu2 }
 0x1f8   :  { %v738_v15 = vadd.f32 %v737_v2, %v673_v33 }
 0x1fa   :  { %v763_v20 = vmax.f32 %v738_v15, 0.0 }
 0x1fb   :  { %v675_v48 = vpop.f32.mrf.mxu1 }
 0x1fc   :  { %v676_v38 = vadd.f32 %v675_v48, %v1346_v41  ;;  %v762_v41 = vmax.f32 %v735_v17, 0.0 }
 0x1ff   :  { %v740_v55 = vpop.f32.mrf.mxu2 }
 0x200   :  { %v741_v12 = vadd.f32 %v740_v55, %v676_v38 }
 0x203   :  { %v678_v50 = vpop.f32.mrf.mxu1 }
 0x204   :  { %v679_v59 = vadd.f32 %v678_v50, %v1354_v18  ;;  %v764_v18 = vmax.f32 %v741_v12, 0.0 }
 0x207   :  { %v743_v4 = vpop.f32.mrf.mxu2 }
 0x208   :  { %v744_v1 = vadd.f32 %v743_v4, %v679_v59 }
 0x20b   :  { %v681_v52 = vpop.f32.mrf.mxu1 }
 0x20c   :  { %v682_v6 = vadd.f32 %v681_v52, %v1364_v60  ;;  %v765_v60 = vmax.f32 %v744_v1, 0.0 }
 0x20f   :  { %v746_v46 = vpop.f32.mrf.mxu2 }
 0x210   :  { %v747_v8 = vadd.f32 %v746_v46, %v682_v6 }
 0x212   :  { %v766_v13 = vmax.f32 %v747_v8, 0.0 }
 0x213   :  { %v684_v56 = vpop.f32.mrf.mxu1 }
 0x214   :  { %v685_v7 = vadd.f32 %v684_v56, %v1335_v62  ;;  %v667_v62 = vadd.f32 %v666_v34, %v1356_v45  ;;  %v756_v45 = vmax.f32 %v1390_v39, 0.0  ;;  %v773_v39 = vpop.permute.xlu0 %772 }
 0x216   :  { %v732_v27 = vadd.f32 %v731_v31, %v667_v62 }
 0x217   :  { %v749_v42 = vpop.f32.mrf.mxu2 }
 0x218   :  { %v750_v9 = vadd.f32 %v749_v42, %v685_v7  ;;  %v761_v23 = vmax.f32 %v732_v27, 0.0 }
 0x21a   :  { %v767_v11 = vmax.f32 %v750_v9, 0.0 }
 0x21c   :  { %775 = vmatpush.msrb.mxu3 %v767_v11 }
 0x21e   :  { %776 = vmatpush.msrb.mxu3 %v766_v13 }
 0x220   :  { %777 = vmatpush.msrb.mxu3 %v765_v60 }
 0x222   :  { %778 = vmatpush.msrb.mxu3 %v764_v18 }
 0x224   :  { %779 = vmatpush.msrb.mxu3 %v763_v20 }
 0x226   :  { %780 = vmatpush.msrb.mxu3 %v762_v41 }
 0x228   :  { %781 = vmatpush.msrb.mxu3 %v761_v23 }
 0x22a   :  { %782 = vmatpush.msrb.mxu3 %v760_v5 }
 0x22c   :  { %783 = vmatpush.msrb.mxu3 %v759_v30 }
 0x22e   :  { %784 = vmatpush.msrb.mxu3 %v758_v3 }
 0x230   :  { %785 = vmatpush.msrb.mxu3 %v757_v35 }
 0x232   :  { %786 = vmatpush.msrb.mxu3 %v756_v45 }
 0x234   :  { %787 = vmatpush.msrb.mxu3 %v755_v37 }
 0x236   :  { %788 = vmatpush.msrb.mxu3 %v754_v19 }
 0x238   :  { %789 = vmatpush.msrb.mxu3 %v753_v16 }
 0x23a   :  { %790 = vmatpush.msrb.mxu3 %v752_v43 }
 0x23b   :  { %791 = vmatmul.f32.vlgmr.msrb.gmra.mxu3 %v768_v40 }
 0x2be   :  { %v792_v44 = vpop.f32.mrf.mxu3 }
 0x2bf   :  { %v793_v47 = vadd.f32 %v792_v44, %v773_v39 }
 0x2c1   :  { %852 = vtanh.f32 %v793_v47 }
 0x2c7   :  { %v853_v14 = vpop.eup %852 }
 0x2c8   :  { %v796_v25 = vmul.f32 2.0, %v853_v14 }
 0x2ca   :  { %797 = vst [vmem:[#allocation2] sm:$0xf] %v796_v25 }
 0x2cb   :  { %808 = dma.vmem_to_hbm [thread:$0]  %s804_s24, 64, %s806_s27, [#allocation3]  }
 0x2cc   :  { %878 = dma.done.wait [#allocation3], 64  }
 0x2cd   :  { %879 = vsyncadd [#allocation3], 4294967232 }
 0x2ce   :  { %813 = vsyncpa [#allocation3], 1 }

</bundles_post_ra>
